<compile_context>
chip_gen: v7x
topology: tpu7x:2x2x1
jax: 0.10.0
libtpu: 0.0.40
codegen_flags: <defaults>
</compile_context>

<pallas_src>
import functools

import jax
import jax.numpy as jnp
from jax.experimental import pallas as pl
from jax.experimental.pallas import tpu as pltpu

EPS = 1e-5
LANES = 128
SUBLANES = 8


def _round_up(x, m):
    return ((x + m - 1) // m) * m


def dense_feature_kernel(num_ref,     # VMEM [B, n_num]   f32
                         idx_ref,     # VMEM [B, n_emb]   int32
                         emb_a_ref,   # VMEM [vocab_a, d] f32  (small table, VMEM-resident)
                         emb_b_ref,   # VMEM [vocab_b, d] f32
                         gamma_ref,   # VMEM [1, F_pad]   f32  (padded with 1)
                         beta_ref,    # VMEM [1, F_pad]   f32  (padded with 0)
                         out_ref,     # VMEM [B, F_pad]   f32
                         *, n_num, f_pad):
    B = num_ref.shape[0]
    ids = idx_ref[...]                                    # [B, n_emb] int32

    # ---- embedding lookup = one-hot gather on the MXU -------------------------------
    # (exact: rows are selected by multiplying with 0.0 / 1.0)
    # NOTE: an out-of-range id yields an all-zero one-hot -> zero embedding row,
    # whereas torch.nn.Embedding would raise.
    def onehot_gather(ids_col, emb_ref):
        vocab, _ = emb_ref.shape
        iota = jax.lax.broadcasted_iota(jnp.int32, (B, vocab), 1)
        onehot = (iota == ids_col).astype(jnp.float32)    # [B, vocab]
        return jnp.dot(onehot, emb_ref[...],
                       preferred_element_type=jnp.float32)  # [B, d]

    e_a = onehot_gather(ids[:, 0:1], emb_a_ref)
    e_b = onehot_gather(ids[:, 1:2], emb_b_ref)

    # ---- assemble concat([numeric, emb_a, emb_b]) + lane padding in registers -------
    d_a = emb_a_ref.shape[1]
    d_b = emb_b_ref.shape[1]
    pad = f_pad - (n_num + d_a + d_b)
    pieces = [num_ref[...], e_a, e_b]
    if pad > 0:
        pieces.append(jnp.zeros((B, pad), jnp.float32))
    x = jnp.concatenate(pieces, axis=1)                   # [B, F_pad]

    # ---- BatchNorm1d (training-mode batch stats, biased variance) -------------------
    # Column sums via ones-row matmuls on the MXU; centered two-pass variance.
    ones_row = jnp.ones((1, B), jnp.float32)
    inv_b = 1.0 / B
    mean = jnp.dot(ones_row, x, preferred_element_type=jnp.float32) * inv_b   # [1, F_pad]
    xc = x - mean
    var = jnp.dot(ones_row, xc * xc, preferred_element_type=jnp.float32) * inv_b
    inv_std = jax.lax.rsqrt(var + EPS)                    # EUP slot
    scale = gamma_ref[...] * inv_std
    out_ref[...] = (xc * scale + beta_ref[...]).astype(out_ref.dtype)  # one lane-dense store
    # TODO(synk): torch BatchNorm1d also updates running_mean / running_var buffers in
    # training mode; that stateful side effect is not reproduced (output is unaffected).


def dense_feature_layer(numeric_feats, idx, emb_a, emb_b, gamma, beta):
    B, n_num = numeric_feats.shape
    d_a = emb_a.shape[1]
    d_b = emb_b.shape[1]
    F = n_num + d_a + d_b
    F_pad = _round_up(F, LANES)

    # Only parameter-sized (1 x F_pad) arrays are padded in the wrapper (negligible).
    gamma_pad = jnp.ones((1, F_pad), jnp.float32).at[:, :F].set(
        gamma.reshape(1, F).astype(jnp.float32))
    beta_pad = jnp.zeros((1, F_pad), jnp.float32).at[:, :F].set(
        beta.reshape(1, F).astype(jnp.float32))

    vmem = pl.BlockSpec(memory_space=pltpu.MemorySpace.VMEM)
    kernel = functools.partial(dense_feature_kernel, n_num=n_num, f_pad=F_pad)

    # Derive the scoped-VMEM budget from actual (8,128)-tile-padded buffer sizes.
    def tile_bytes(shape, itemsize=4):
        r = _round_up(shape[0], SUBLANES)
        c = _round_up(shape[1], LANES)
        return r * c * itemsize

    buf_bytes = (tile_bytes((B, n_num)) + tile_bytes(idx.shape) +
                 tile_bytes(emb_a.shape) + tile_bytes(emb_b.shape) +
                 2 * tile_bytes((1, F_pad)) + tile_bytes((B, F_pad)))
    vmem_limit = int(max(2 * buf_bytes + (2 << 20), 4 << 20))

    out = pl.pallas_call(
        kernel,
        out_shape=jax.ShapeDtypeStruct((B, F_pad), jnp.float32),
        in_specs=[vmem] * 6,
        out_specs=vmem,
        compiler_params=pltpu.CompilerParams(vmem_limit_bytes=vmem_limit),
        cost_estimate=pl.CostEstimate(
            flops=(2 * B * (emb_a.shape[0] * d_a + emb_b.shape[0] * d_b)   # gathers
                   + 4 * B * F_pad                                         # two ones-row matmuls
                   + 8 * B * F_pad),                                       # normalize
            transcendentals=F_pad,
            bytes_accessed=4 * (B * n_num + idx.size + emb_a.size + emb_b.size
                                + 2 * F_pad + B * F_pad),
        ),
    )(numeric_feats.astype(jnp.float32), idx.astype(jnp.int32),
      emb_a.astype(jnp.float32), emb_b.astype(jnp.float32), gamma_pad, beta_pad)
    return out[:, :F]


def reference(numeric_feats, idx, emb_a, emb_b, gamma, beta):
    e_a = emb_a[idx[:, 0]]
    e_b = emb_b[idx[:, 1]]
    x = jnp.concatenate([numeric_feats, e_a, e_b], axis=1)
    mean = jnp.mean(x, axis=0, keepdims=True)
    var = jnp.mean((x - mean) ** 2, axis=0, keepdims=True)
    return (x - mean) * jax.lax.rsqrt(var + EPS) * gamma + beta


if __name__ == "__main__":
    key = jax.random.PRNGKey(0)
    B = 8
    emb_dim = 4
    nrof_cat = {"cat_a": 10, "cat_b": 7}
    k_nx, k_ny, k_ia, k_ib, k_ea, k_eb = jax.random.split(key, 6)
    input_data = {
        "num_x": jax.random.normal(k_nx, (B, 2), jnp.float32),
        "num_y": jax.random.normal(k_ny, (B, 2), jnp.float32),
        "cat_a": jax.random.randint(k_ia, (B,), 0, nrof_cat["cat_a"], jnp.int32),
        "cat_b": jax.random.randint(k_ib, (B,), 0, nrof_cat["cat_b"], jnp.int32),
    }

    # Embedding ~ N(0,1) like torch default; BN affine: gamma=1, beta=0.
    emb_a = jax.random.normal(k_ea, (nrof_cat["cat_a"], emb_dim), jnp.float32)
    emb_b = jax.random.normal(k_eb, (nrof_cat["cat_b"], emb_dim), jnp.float32)
    input_size = 4 + 2 * emb_dim  # = 12
    gamma = jnp.ones((1, input_size), jnp.float32)
    beta = jnp.zeros((1, input_size), jnp.float32)

    # Glue: concat numeric columns, stack categorical ids into [B, n_emb].
    numeric_feats = jnp.concatenate([input_data["num_x"], input_data["num_y"]], axis=1)
    idx = jnp.stack([input_data["cat_a"], input_data["cat_b"]], axis=1).astype(jnp.int32)

    out = dense_feature_layer(numeric_feats, idx, emb_a, emb_b, gamma, beta)
    out = jax.block_until_ready(out)

    ref = reference(numeric_feats, idx, emb_a, emb_b, gamma, beta)
    assert out.shape == (B, input_size)
    assert jnp.allclose(out, ref, atol=1e-4, rtol=1e-4), "mismatch vs reference"
    print("KERNEL_OK")
</pallas_src>

<mosaic_0001>
module attributes {stable_mosaic.version = 11 : i64} {
  func.func @dense_feature_kernel(%arg0: memref<8x4xf32, #tpu.memory_space<vmem>>, %arg1: memref<8x2xi32, #tpu.memory_space<vmem>>, %arg2: memref<10x4xf32, #tpu.memory_space<vmem>>, %arg3: memref<7x4xf32, #tpu.memory_space<vmem>>, %arg4: memref<1x128xf32, #tpu.memory_space<vmem>>, %arg5: memref<1x128xf32, #tpu.memory_space<vmem>>, %arg6: memref<8x128xf32, #tpu.memory_space<vmem>>) attributes {dimension_semantics = [], scalar_prefetch = 0 : i64, scratch_operands = 0 : i64, tpu.core_type = #tpu.core_type<tc>} {
    %c0 = arith.constant 0 : index
    %c0_0 = arith.constant 0 : index
    %0 = vector.load %arg1[%c0, %c0_0] : memref<8x2xi32, #tpu.memory_space<vmem>>, vector<8x2xi32>
    %1 = vector.extract_strided_slice %0 {offsets = [0, 0], sizes = [8, 1], strides = [1, 1]} : vector<8x2xi32> to vector<8x1xi32>
    %2 = tpu.iota {dimensions = array<i32: 1>} : vector<8x10xi32>
    %3 = vector.broadcast %1 : vector<8x1xi32> to vector<8x10xi32>
    %4 = arith.cmpi eq, %2, %3 : vector<8x10xi32>
    %5 = arith.extui %4 : vector<8x10xi1> to vector<8x10xi32>
    %6 = arith.sitofp %5 : vector<8x10xi32> to vector<8x10xf32>
    %c0_1 = arith.constant 0 : index
    %c0_2 = arith.constant 0 : index
    %7 = vector.load %arg2[%c0_1, %c0_2] : memref<10x4xf32, #tpu.memory_space<vmem>>, vector<10x4xf32>
    %cst = arith.constant dense<0.000000e+00> : vector<8x4xf32>
    %8 = tpu.matmul %6, %7, %cst {dimension_numbers = #tpu.dot_dimension_numbers<[1], [0], [0], [1], [0, 0, 1, 1], [], []>} : vector<8x10xf32>, vector<10x4xf32>, vector<8x4xf32> -> vector<8x4xf32>
    %9 = vector.extract_strided_slice %0 {offsets = [0, 1], sizes = [8, 1], strides = [1, 1]} : vector<8x2xi32> to vector<8x1xi32>
    %10 = tpu.iota {dimensions = array<i32: 1>} : vector<8x7xi32>
    %11 = vector.broadcast %9 : vector<8x1xi32> to vector<8x7xi32>
    %12 = arith.cmpi eq, %10, %11 : vector<8x7xi32>
    %13 = arith.extui %12 : vector<8x7xi1> to vector<8x7xi32>
    %14 = arith.sitofp %13 : vector<8x7xi32> to vector<8x7xf32>
    %c0_3 = arith.constant 0 : index
    %c0_4 = arith.constant 0 : index
    %15 = vector.load %arg3[%c0_3, %c0_4] : memref<7x4xf32, #tpu.memory_space<vmem>>, vector<7x4xf32>
    %cst_5 = arith.constant dense<0.000000e+00> : vector<8x4xf32>
    %16 = tpu.matmul %14, %15, %cst_5 {dimension_numbers = #tpu.dot_dimension_numbers<[1], [0], [0], [1], [0, 0, 1, 1], [], []>} : vector<8x7xf32>, vector<7x4xf32>, vector<8x4xf32> -> vector<8x4xf32>
    %c0_6 = arith.constant 0 : index
    %c0_7 = arith.constant 0 : index
    %17 = vector.load %arg0[%c0_6, %c0_7] : memref<8x4xf32, #tpu.memory_space<vmem>>, vector<8x4xf32>
    %cst_8 = arith.constant 0.000000e+00 : f32
    %18 = vector.broadcast %cst_8 : f32 to vector<8x116xf32>
    %19 = tpu.concatenate %17, %8, %16, %18 in 1 : vector<8x4xf32>, vector<8x4xf32>, vector<8x4xf32>, vector<8x116xf32> -> vector<8x128xf32>
    %cst_9 = arith.constant 1.000000e+00 : f32
    %20 = vector.broadcast %cst_9 : f32 to vector<1x8xf32>
    %cst_10 = arith.constant dense<0.000000e+00> : vector<1x128xf32>
    %21 = tpu.matmul %20, %19, %cst_10 {dimension_numbers = #tpu.dot_dimension_numbers<[1], [0], [0], [1], [0, 0, 1, 1], [], []>} : vector<1x8xf32>, vector<8x128xf32>, vector<1x128xf32> -> vector<1x128xf32>
    %cst_11 = arith.constant 1.250000e-01 : f32
    %22 = vector.broadcast %cst_11 : f32 to vector<1x128xf32>
    %23 = arith.mulf %21, %22 : vector<1x128xf32>
    %24 = vector.broadcast %23 : vector<1x128xf32> to vector<8x128xf32>
    %25 = arith.subf %19, %24 : vector<8x128xf32>
    %26 = arith.mulf %25, %25 : vector<8x128xf32>
    %cst_12 = arith.constant dense<0.000000e+00> : vector<1x128xf32>
    %27 = tpu.matmul %20, %26, %cst_12 {dimension_numbers = #tpu.dot_dimension_numbers<[1], [0], [0], [1], [0, 0, 1, 1], [], []>} : vector<1x8xf32>, vector<8x128xf32>, vector<1x128xf32> -> vector<1x128xf32>
    %cst_13 = arith.constant 1.250000e-01 : f32
    %28 = vector.broadcast %cst_13 : f32 to vector<1x128xf32>
    %29 = arith.mulf %27, %28 : vector<1x128xf32>
    %cst_14 = arith.constant 9.99999974E-6 : f32
    %30 = vector.broadcast %cst_14 : f32 to vector<1x128xf32>
    %31 = arith.addf %29, %30 : vector<1x128xf32>
    %32 = math.rsqrt %31 : vector<1x128xf32>
    %c0_15 = arith.constant 0 : index
    %c0_16 = arith.constant 0 : index
    %33 = vector.load %arg4[%c0_15, %c0_16] : memref<1x128xf32, #tpu.memory_space<vmem>>, vector<1x128xf32>
    %34 = arith.mulf %33, %32 : vector<1x128xf32>
    %35 = vector.broadcast %34 : vector<1x128xf32> to vector<8x128xf32>
    %36 = arith.mulf %25, %35 : vector<8x128xf32>
    %c0_17 = arith.constant 0 : index
    %c0_18 = arith.constant 0 : index
    %37 = vector.load %arg5[%c0_17, %c0_18] : memref<1x128xf32, #tpu.memory_space<vmem>>, vector<1x128xf32>
    %38 = vector.broadcast %37 : vector<1x128xf32> to vector<8x128xf32>
    %39 = arith.addf %36, %38 : vector<8x128xf32>
    %c0_19 = arith.constant 0 : index
    %c0_20 = arith.constant 0 : index
    %40 = vector.load %arg6[%c0_19, %c0_20] : memref<8x128xf32, #tpu.memory_space<vmem>>, vector<8x128xf32>
    tpu.vector_store %arg6[%c0_19, %c0_20], %39 {strides = array<i32>} : memref<8x128xf32, #tpu.memory_space<vmem>>, vector<8x128xf32>,
    return
  }
}

</mosaic_0001>

<bundles_post_ra>
// kernel: tpu_custom_call.1
= control target key start
LH: loop header
LB: loop body
LE: loop exit
PB: predicated region body
PF: predicated region fallthrough
CT: control target
= control target key end

     0   :  { %vm39_vm0 = vcmask 1041408   ;;  %v481_v2 = vmov 0   ;;  %v482_v3 = vmov 0.0|0.0   ;;  %s566_s0 = inlined_call_operand.vmem [shape: f32[8,4], index: 0, kind: input, shape index: {}]   ;;  %s567_s1 = inlined_call_operand.vmem [shape: s32[8,2], index: 1, kind: input, shape index: {}]   ;;  %s568_s2 = inlined_call_operand.vmem [shape: f32[10,4], index: 2, kind: input, shape index: {}]   ;;  %s569_s3 = inlined_call_operand.vmem [shape: f32[7,4], index: 3, kind: input, shape index: {}]   ;;  %s570_s4 = inlined_call_operand.vmem [shape: f32[1,128], index: 4, kind: input, shape index: {}]   ;;  %s571_s5 = inlined_call_operand.vmem [shape: f32[1,128], index: 5, kind: input, shape index: {}]   ;;  %s572_s6 = inlined_call_operand.hbm [shape: f32[8,128], index: 6, kind: output, shape index: {}]  }
   0x1   :  { %v24_v0 = vld [vmem:[%s567_s1] sm:$0xff]  ;;  %453 = vset.pattern.permute.xlu0 %v481_v2  ;;  %439 = vmatprep.subr.bf16.mxu0 %v482_v3  ;;  %v34_v4 = vld [vmem:[%s568_s2 + $0x8] sm:$0x3] }
   0x2   :  { %v33_v1 = vld [vmem:[%s568_s2] sm:$0xff] }
   0x3   :  { %11 = vsyncpa [#allocation3], 0  ;;  %28 = vperm.xlu0 %453, %v24_v0   ;;  %v440_v5 = vpack.c.bf16 %v34_v4, %v33_v1  ;;  %vm483_vm1 = vmmov 1   ;;  %v484_v6 = vmov 0.0   ;;  %vm485_vm3 = vmmov 0   ;;  %s487_s2 = smov 4  }
   0x4   :  { %vm441_vm2 = vmpackc.low %vm39_vm0, %vm483_vm1  ;;  %424 = vmatprep.subr.mxu1 %v484_v6  ;;  %421 = vmatprep.mubr.msk.f32.mxu0 %vm485_vm3, %v484_v6  ;;  %v486_v7 = vmov 1   ;;  %v119_v8 = vld [vmem:[%s569_s3] sm:$0x7f]  ;;  %vm124_vm4 = vcmask 1046528   ;;  %v25_v9 = vlaneseq  ;;  %vm35_vm5 = vcmask 80896   ;;  %s488_s3 = smov 8  }
   0x5   :  { %426 = vmatprep.mubr.msk.f32.mxu1 %vm485_vm3, %v484_v6  ;;  %442 = vmatpush3.bf16.msk.msra.mxu0 %vm441_vm2, %v440_v5  ;;  %vm120_vm7 = vcmask 56320   ;;  %v198_v20 = vld [vmem:[%s566_s0] sm:$0xff]  ;;  %vm207_vm9 = vcmask 31744   ;;  %vm209_vm10 = vcmask 64512   ;;  %vm211_vm11 = vcmask 97280   ;;  %s490_s9 = smov [#allocation2]  }
   0x6   :  { %434 = vmatprep.subr.mxu0 %v484_v6  ;;  %425 = vmatpush3.msk.msra.mxu1 %vm124_vm4, %v119_v8  ;;  %v26_v10 = vand.u32 127, %v25_v9  ;;  %v489_v25 = vmov 1.0   ;;  %v288_v26 = vshrl.u32 %v25_v9, 7  ;;  %v366_v38 = vld [vmem:[%s570_s4] sm:$0x1]  ;;  %s390_s10 = sshll.u32 %s490_s9, 4  ;;  %s391_s10 = int_to_ptr.vmem [resolvable:$true] %s390_s10 }
   0x7   :  { %454 = vset.pattern.permute.xlu0 %v486_v7  ;;  %429 = vmatprep.subr.mxu1 %v484_v6  ;;  %v407_v42 = vld [vmem:[%s571_s5] ss:$0 sm:$0xff]  ;;  %s457_s11 = scalar_lea.vmem %s391_s10, 128  ;;  %p462_p1 = scmp.lt.s32.totalorder %s391_s10, %s391_s10 }
   0x8   :  { %114 = vperm.xlu0 %454, %v24_v0   ;;  %v289_v27 = vsub.s32 0, %v288_v26  ;;  %p458_p0 = scmp.ne.s32.totalorder %s391_s10, %s457_s11  ;;  %p463_p2 = scmp.lt.s32.totalorder %s457_s11, %s457_s11 }
   0xa   :  { %p464_p3 = por %p463_p2, %p462_p1 }
   0xc   :  { %p465_p4 = pnand %p464_p3, %p458_p0 }
  0x82   :  { %v29_v11 = vpop.permute.xlu0 %28 }
  0x83   :  { %vm30_vm6 = vcmp.eq.s32.totalorder %v26_v10, %v29_v11 }
  0x84   :  { %v398_v12 = vsel %vm30_vm6, 1.0, %v484_v6 }
  0x85   :  { %422 = vmatmul.mubr.msk.f32.vlgmr.msra.gmra.mrb[0].mxu0 %vm35_vm5, %v398_v12 }
  0x86   :  { %436 = vmatprep.mubr.msk.f32.mxu0 %vm485_vm3, %v484_v6 }
  0x87   :  { %v115_v13 = vpop.permute.xlu0 %114 }
  0x88   :  { %vm116_vm8 = vcmp.eq.s32.totalorder %v26_v10, %v115_v13 }
  0x89   :  { %v401_v14 = vsel %vm116_vm8, 1.0, %v484_v6 }
  0x8a   :  { %427 = vmatmul.mubr.msk.f32.vlgmr.msra.gmra.mrb[0].mxu1 %vm120_vm7, %v401_v14 }
  0x8b   :  { %431 = vmatprep.mubr.msk.f32.mxu1 %vm485_vm3, %v484_v6 }
 0x158   :  { %v109_v15 = vpop.f32.mrb[0].mxu0 }
 0x159   :  { %200 = vrot.lane.b32.xlu1 %v109_v15, %s487_s2  ;;  %v423_v16 = vpop.f32.mrb[1].mxu0 }
 0x15d   :  { %v194_v17 = vpop.f32.mrb[0].mxu1 }
 0x15e   :  { %204 = vrot.lane.b32.xlu1 %v194_v17, %s488_s3  ;;  %v428_v18 = vpop.f32.mrb[1].mxu1 }
 0x1cb   :  { %v201_v19 = vpop.permute.xlu1 %200 }
 0x1cc   :  { %v208_v21 = vsel %vm207_vm9, %v198_v20, %v201_v19 }
 0x1d0   :  { %v205_v22 = vpop.permute.xlu1 %204 }
 0x1d1   :  { %v210_v23 = vsel %vm209_vm10, %v208_v21, %v205_v22 }
 0x1d2   :  { %v212_v24 = vsel %vm211_vm11, %v210_v23, 0.0  ;;  %430 = vmatpush3.msk.msra.mxu1 %vm211_vm11, %v210_v23 }
 0x1d3   :  { %432 = vmatmul.mubr.msk.f32.vlgmr.msra.gmra.mrb[2].mxu1 %vm209_vm10, %v489_v25 }
 0x2a6   :  { %v282_v28 = vpop.f32.mrb[2].mxu1 }
 0x2a7   :  { %v286_v29 = vmul.f32 0.125, %v282_v28  ;;  %v433_v30 = vpop.f32.mrb[3].mxu1 }
 0x2a9   :  { %v290_v31 = vrot.slane %v286_v29, %v289_v27 }
 0x2ab   :  { %v291_v32 = vsub.f32 %v212_v24, %v290_v31 }
 0x2ad   :  { %v292_v33 = vmul.f32 %v291_v32, %v291_v32 }
 0x2af   :  { %435 = vmatpush3.msra.mxu0 %v292_v33 }
 0x2b0   :  { %437 = vmatmul.mubr.msk.f32.vlgmr.msra.gmra.mrb[2].mxu0 %vm209_vm10, %v489_v25 }
 0x383   :  { %v359_v34 = vpop.f32.mrb[2].mxu0 }
 0x384   :  { %v363_v35 = vmul.f32 0.125, %v359_v34  ;;  %v438_v36 = vpop.f32.mrb[3].mxu0 }
 0x386   :  { %v364_v37 = vadd.f32 1e-05, %v363_v35 }
 0x388   :  { %455 = vrsqrt.f32 %v364_v37 }
 0x392   :  { %v456_v39 = vpop.eup %455 }
 0x393   :  { %v367_v40 = vmul.f32 %v456_v39, %v366_v38 }
 0x395   :  { %v372_v41 = vrot.slane %v367_v40, %v289_v27 }
 0x397   :  { %v374_v43 = vmul.f32 %v372_v41, %v291_v32 }
 0x399   :  { %v382_v44 = vadd.f32 %v407_v42, %v374_v43 }
 0x39b   :  { %383 = vst [vmem:[#allocation2] sm:$0xff] %v382_v44 }
 0x39c   :  { %468 = shalt.err (!%p465_p4)
}
 0x39d   :  { %s469_s13 = scalar_lea.hbm %s572_s6, 128 }
 0x39e   :  { %p470_p5 = scmp.ne.s32.totalorder %s572_s6, %s469_s13  ;;  %p473_p6 = scmp.lt.u32.totalorder %s469_s13, %s572_s6 }
 0x3a0   :  { %p475_p7 = pnand %p473_p6, %p470_p5 }
 0x3a2   :  { %478 = shalt.err (!%p475_p7)
}
 0x3a3   :  { %393 = dma.vmem_to_hbm [thread:$0]  %s391_s10, 128, %s572_s6, [#allocation3]  }
 0x3a4   :  { %479 = dma.done.wait [#allocation3], 128  }
 0x3a5   :  { %480 = vsyncadd [#allocation3], 4294967168 }
 0x3a6   :  { %397 = vsyncpa [#allocation3], 1 }

</bundles_post_ra>
